<compile_context>
chip_gen: v6e
topology: v6e:2x2x1
jax: 0.10.0
libtpu: 0.0.40
codegen_flags: <defaults>
</compile_context>

<pallas_src>
import functools
import math

import jax
import jax.numpy as jnp
from jax.experimental import pallas as pl
from jax.experimental.pallas import tpu as pltpu

N_FFT = 256
HOP = N_FFT // 4                 # 64
TO_PAD = (N_FFT - HOP) // 2      # 96   (STFT_conv is_v4=True branch)
K = N_FFT // 2 + 1               # 129 one-sided frequency bins
K_PAD = 256                      # lane-aligned width of each half of the fused RHS
N_CHUNKS = N_FFT // HOP          # 4 hop-chunks per frame
EXTRA_ROWS = 8                   # sublane-aligned lookahead hop-rows per tile
MAX_TILE_FRAMES = 512            # frames per grid step (multiple of 8 and 128)


def _round_up(x, m):
    return (x + m - 1) // m * m


def _hann(n_fft):
    # torch.hann_window default (periodic): 0.5 * (1 - cos(2*pi*n/N))
    n = jnp.arange(n_fft, dtype=jnp.float32)
    return 0.5 - 0.5 * jnp.cos(2.0 * math.pi * n / n_fft)


def _make_bases():
    """Windowed real / imag DFT bases, each (n_fft, K) float32."""
    n = jnp.arange(N_FFT, dtype=jnp.float32)[:, None]
    k = jnp.arange(K, dtype=jnp.float32)[None, :]
    ang = 2.0 * math.pi * n * k / N_FFT
    win = _hann(N_FFT)[:, None]
    return win * jnp.cos(ang), -win * jnp.sin(ang)


def _make_fused_basis(dtype):
    """(n_fft, 2*K_PAD) fused RHS: [cos | zero-pad | sin | zero-pad]."""
    cos_b, sin_b = _make_bases()
    zpad = jnp.zeros((N_FFT, K_PAD - K), jnp.float32)
    fused = jnp.concatenate([cos_b, zpad, sin_b, zpad], axis=1)  # (256, 512)
    return fused.astype(dtype)


def _stft_mag_kernel(tile_f, sig_ref, nxt_ref, basis_ref, out_ref,
                     frames_scr, sig_scr):
    """One tile of `tile_f` STFT frames for one batch element.

    sig_ref   : (1, tile_f, HOP)         hop-rows i*tile_f .. (i+1)*tile_f - 1
    nxt_ref   : (1, EXTRA_ROWS, HOP)     the EXTRA_ROWS hop-rows that follow
    basis_ref : (N_FFT, 2*K_PAD)         fused windowed DFT basis
    out_ref   : (1, tile_f, K_PAD)       magnitude spectrum (cols >= K are 0)
    frames_scr: (tile_f, N_FFT)          VMEM scratch: assembled frames
    sig_scr   : (tile_f+EXTRA_ROWS, HOP) VMEM scratch: contiguous hop-rows
    """
    # Stage the contiguous run of hop-rows this tile needs (aligned stores).
    sig_scr[0:tile_f, :] = sig_ref[0]
    sig_scr[tile_f:tile_f + EXTRA_ROWS, :] = nxt_ref[0]

    # In-VMEM frame assembly: frame f = hop-rows f, f+1, f+2, f+3 laid side by
    # side on lanes.  Every audio sample was read from HBM exactly once.
    for c in range(N_CHUNKS):
        frames_scr[:, c * HOP:(c + 1) * HOP] = sig_scr[c:c + tile_f, :]

    # Single fused MXU matmul: real half in lanes [0:256), imag in [256:512).
    frames = frames_scr[...].astype(basis_ref.dtype)
    y = jnp.dot(frames, basis_ref[...], preferred_element_type=jnp.float32)
    real = y[:, :K_PAD]
    imag = y[:, K_PAD:]
    out_ref[0] = jnp.sqrt(real * real + imag * imag)


@functools.partial(jax.jit, static_argnames=("use_bf16", "max_tile_frames"))
def stft_forward(x, *, use_bf16=False, max_tile_frames=MAX_TILE_FRAMES):
    """x: (B, T) float32 -> (B, 129, F) magnitude spectrogram (Silero V4 STFT)."""
    B, T = x.shape
    xp = jnp.pad(x, ((0, 0), (TO_PAD, TO_PAD)), mode="reflect")
    L = T + 2 * TO_PAD
    n_frames = (L - N_FFT) // HOP + 1          # == torch conv1d output length

    # Tile sizing: as large as possible (up to 512 frames) so the MXU is fed
    # with hundreds of rows per step; collapses to one step for toy shapes.
    # For B == 1 aim for >= 2 tiles so v7x's second TensorCore has work.
    min_tiles = 1 if B > 1 else 2
    tile_f = min(max_tile_frames,
                 _round_up(max(1, (n_frames + min_tiles - 1) // min_tiles), 8))
    n_tiles = (n_frames + tile_f - 1) // tile_f
    f_pad = n_tiles * tile_f
    n_rows = f_pad + EXTRA_ROWS                # hop-rows per batch element

    # Zero-pad the tail and view the padded signal as hop-rows of 64 samples.
    xp = jnp.pad(xp, ((0, 0), (0, n_rows * HOP - L)))
    rows = xp.reshape(B, n_rows, HOP)

    basis = _make_fused_basis(jnp.bfloat16 if use_bf16 else jnp.float32)

    extra_stride = tile_f // EXTRA_ROWS        # block stride of the lookahead
    kernel = functools.partial(_stft_mag_kernel, tile_f)

    out = pl.pallas_call(
        kernel,
        out_shape=jax.ShapeDtypeStruct((B, f_pad, K_PAD), jnp.float32),
        grid=(B, n_tiles),
        in_specs=[
            # main hop-row tile for this frame tile
            pl.BlockSpec((1, tile_f, HOP), lambda b, i: (b, i, 0)),
            # 8-row aligned lookahead: the rows right after the main tile
            pl.BlockSpec((1, EXTRA_ROWS, HOP),
                         lambda b, i: (b, (i + 1) * extra_stride, 0)),
            # fused DFT basis, resident across the whole grid
            pl.BlockSpec((N_FFT, 2 * K_PAD), lambda b, i: (0, 0)),
        ],
        out_specs=pl.BlockSpec((1, tile_f, K_PAD), lambda b, i: (b, i, 0)),
        scratch_shapes=[
            pltpu.VMEM((tile_f, N_FFT), jnp.float32),
            pltpu.VMEM((tile_f + EXTRA_ROWS, HOP), jnp.float32),
        ],
        compiler_params=pltpu.CompilerParams(
            dimension_semantics=("parallel", "parallel")),
    )(rows, rows, basis)

    mag = out[:, :n_frames, :K]                # drop pad frames / pad bins
    return jnp.transpose(mag, (0, 2, 1))       # (B, 129, F) like torch


def stft_forward_ref(x):
    """Pure-JAX reference for correctness checking."""
    B, T = x.shape
    xp = jnp.pad(x, ((0, 0), (TO_PAD, TO_PAD)), mode="reflect")
    L = T + 2 * TO_PAD
    n_frames = (L - N_FFT) // HOP + 1
    idx = jnp.arange(n_frames)[:, None] * HOP + jnp.arange(N_FFT)[None, :]
    frames = xp[:, idx]                        # (B, F, n_fft)
    cos_b, sin_b = _make_bases()
    real = jnp.einsum("bfn,nk->bfk", frames, cos_b,
                      precision=jax.lax.Precision.HIGHEST)
    imag = jnp.einsum("bfn,nk->bfk", frames, sin_b,
                      precision=jax.lax.Precision.HIGHEST)
    mag = jnp.sqrt(real * real + imag * imag)
    return jnp.transpose(mag, (0, 2, 1))


if __name__ == "__main__":
    key = jax.random.PRNGKey(0)
    B, T = 2, 512                              # audio: batch=2, 512 samples
    x = jax.random.normal(key, (B, T), dtype=jnp.float32)

    out = jax.block_until_ready(stft_forward(x))
    ref = jax.block_until_ready(stft_forward_ref(x))

    n_frames = (T + 2 * TO_PAD - N_FFT) // HOP + 1
    assert out.shape == (B, K, n_frames), out.shape
    assert bool(jnp.allclose(out, ref, atol=2e-3, rtol=1e-3)), \
        "f32 kernel mismatch vs reference"

    # Optional bf16 MXU path (v6e/v7x): bf16 inputs, f32 accumulation.
    out_bf16 = jax.block_until_ready(stft_forward(x, use_bf16=True))
    max_err = float(jnp.max(jnp.abs(out_bf16 - ref)))
    assert max_err < 0.05 * (float(jnp.max(jnp.abs(ref))) + 1.0), max_err

    print("KERNEL_OK")
</pallas_src>

<mosaic_0001>
module attributes {stable_mosaic.version = 11 : i64} {
  func.func @_stft_mag_kernel(%arg0: i32, %arg1: i32, %arg2: memref<1x8x64xf32, #tpu.memory_space<vmem>>, %arg3: memref<1x8x64xf32, #tpu.memory_space<vmem>>, %arg4: memref<256x512xf32, #tpu.memory_space<vmem>>, %arg5: memref<1x8x256xf32, #tpu.memory_space<vmem>>, %arg6: memref<8x256xf32, #tpu.memory_space<vmem>>, %arg7: memref<16x64xf32, #tpu.memory_space<vmem>>) attributes {dimension_semantics = [#tpu.dimension_semantics<parallel>, #tpu.dimension_semantics<parallel>], iteration_bounds = array<i64: 2, 1>, scalar_prefetch = 0 : i64, scratch_operands = 2 : i64, tpu.core_type = #tpu.core_type<tc>, window_params = [{transform_indices = @transform_0, window_bounds = array<i64: 1, 8, 64>}, {transform_indices = @transform_1, window_bounds = array<i64: 1, 8, 64>}, {pipeline_mode = #tpu.pipeline_mode<synchronous>, transform_indices = @transform_2, window_bounds = array<i64: 256, 512>}, {transform_indices = @transform_3, window_bounds = array<i64: 1, 8, 256>}]} {
    %c0 = arith.constant 0 : index
    %c0_0 = arith.constant 0 : index
    %c0_1 = arith.constant 0 : index
    %0 = vector.load %arg2[%c0, %c0_0, %c0_1] : memref<1x8x64xf32, #tpu.memory_space<vmem>>, vector<1x8x64xf32>
    %1 = vector.shape_cast %0 : vector<1x8x64xf32> to vector<8x64xf32>
    %c0_2 = arith.constant 0 : index
    %c0_3 = arith.constant 0 : index
    %2 = vector.load %arg7[%c0_2, %c0_3] : memref<16x64xf32, #tpu.memory_space<vmem>>, vector<8x64xf32>
    tpu.vector_store %arg7[%c0_2, %c0_3], %1 {strides = array<i32>} : memref<16x64xf32, #tpu.memory_space<vmem>>, vector<8x64xf32>,
    %c0_4 = arith.constant 0 : index
    %c0_5 = arith.constant 0 : index
    %c0_6 = arith.constant 0 : index
    %3 = vector.load %arg3[%c0_4, %c0_5, %c0_6] : memref<1x8x64xf32, #tpu.memory_space<vmem>>, vector<1x8x64xf32>
    %4 = vector.shape_cast %3 : vector<1x8x64xf32> to vector<8x64xf32>
    %c8 = arith.constant 8 : index
    %c0_7 = arith.constant 0 : index
    %5 = vector.load %arg7[%c8, %c0_7] : memref<16x64xf32, #tpu.memory_space<vmem>>, vector<8x64xf32>
    tpu.vector_store %arg7[%c8, %c0_7], %4 {strides = array<i32>} : memref<16x64xf32, #tpu.memory_space<vmem>>, vector<8x64xf32>,
    %c0_8 = arith.constant 0 : index
    %c0_9 = arith.constant 0 : index
    %6 = vector.load %arg7[%c0_8, %c0_9] : memref<16x64xf32, #tpu.memory_space<vmem>>, vector<8x64xf32>
    %c0_10 = arith.constant 0 : index
    %c0_11 = arith.constant 0 : index
    %7 = vector.load %arg6[%c0_10, %c0_11] : memref<8x256xf32, #tpu.memory_space<vmem>>, vector<8x64xf32>
    tpu.vector_store %arg6[%c0_10, %c0_11], %6 {strides = array<i32>} : memref<8x256xf32, #tpu.memory_space<vmem>>, vector<8x64xf32>,
    %c1 = arith.constant 1 : index
    %c0_12 = arith.constant 0 : index
    %8 = vector.load %arg7[%c1, %c0_12] : memref<16x64xf32, #tpu.memory_space<vmem>>, vector<8x64xf32>
    %c0_13 = arith.constant 0 : index
    %c64 = arith.constant 64 : index
    %9 = vector.load %arg6[%c0_13, %c64] : memref<8x256xf32, #tpu.memory_space<vmem>>, vector<8x64xf32>
    tpu.vector_store %arg6[%c0_13, %c64], %8 {strides = array<i32>} : memref<8x256xf32, #tpu.memory_space<vmem>>, vector<8x64xf32>,
    %c2 = arith.constant 2 : index
    %c0_14 = arith.constant 0 : index
    %10 = vector.load %arg7[%c2, %c0_14] : memref<16x64xf32, #tpu.memory_space<vmem>>, vector<8x64xf32>
    %c0_15 = arith.constant 0 : index
    %c128 = arith.constant 128 : index
    %11 = vector.load %arg6[%c0_15, %c128] : memref<8x256xf32, #tpu.memory_space<vmem>>, vector<8x64xf32>
    tpu.vector_store %arg6[%c0_15, %c128], %10 {strides = array<i32>} : memref<8x256xf32, #tpu.memory_space<vmem>>, vector<8x64xf32>,
    %c3 = arith.constant 3 : index
    %c0_16 = arith.constant 0 : index
    %12 = vector.load %arg7[%c3, %c0_16] : memref<16x64xf32, #tpu.memory_space<vmem>>, vector<8x64xf32>
    %c0_17 = arith.constant 0 : index
    %c192 = arith.constant 192 : index
    %13 = vector.load %arg6[%c0_17, %c192] : memref<8x256xf32, #tpu.memory_space<vmem>>, vector<8x64xf32>
    tpu.vector_store %arg6[%c0_17, %c192], %12 {strides = array<i32>} : memref<8x256xf32, #tpu.memory_space<vmem>>, vector<8x64xf32>,
    %c0_18 = arith.constant 0 : index
    %c0_19 = arith.constant 0 : index
    %14 = vector.load %arg6[%c0_18, %c0_19] : memref<8x256xf32, #tpu.memory_space<vmem>>, vector<8x256xf32>
    %c0_20 = arith.constant 0 : index
    %c0_21 = arith.constant 0 : index
    %15 = vector.load %arg4[%c0_20, %c0_21] : memref<256x512xf32, #tpu.memory_space<vmem>>, vector<256x512xf32>
    %cst = arith.constant dense<0.000000e+00> : vector<8x512xf32>
    %16 = tpu.matmul %14, %15, %cst {dimension_numbers = #tpu.dot_dimension_numbers<[1], [0], [0], [1], [0, 0, 1, 1], [], []>} : vector<8x256xf32>, vector<256x512xf32>, vector<8x512xf32> -> vector<8x512xf32>
    %17 = vector.extract_strided_slice %16 {offsets = [0, 0], sizes = [8, 256], strides = [1, 1]} : vector<8x512xf32> to vector<8x256xf32>
    %18 = vector.extract_strided_slice %16 {offsets = [0, 256], sizes = [8, 256], strides = [1, 1]} : vector<8x512xf32> to vector<8x256xf32>
    %19 = arith.mulf %17, %17 : vector<8x256xf32>
    %20 = arith.mulf %18, %18 : vector<8x256xf32>
    %21 = arith.addf %19, %20 : vector<8x256xf32>
    %22 = math.sqrt %21 : vector<8x256xf32>
    %c0_22 = arith.constant 0 : index
    %c0_23 = arith.constant 0 : index
    %c0_24 = arith.constant 0 : index
    %23 = vector.load %arg5[%c0_22, %c0_23, %c0_24] : memref<1x8x256xf32, #tpu.memory_space<vmem>>, vector<1x8x256xf32>
    %24 = vector.shape_cast %23 : vector<1x8x256xf32> to vector<8x256xf32>
    %25 = vector.shape_cast %22 : vector<8x256xf32> to vector<1x8x256xf32>
    tpu.vector_store %arg5[%c0_22, %c0_23, %c0_24], %25 {strides = array<i32>} : memref<1x8x256xf32, #tpu.memory_space<vmem>>, vector<1x8x256xf32>,
    return
  }
  func.func @transform_0(%arg0: i32, %arg1: i32) -> (i32, i32, i32) {
    %c0_i32 = arith.constant 0 : i32
    %c0_i32_0 = arith.constant 0 : i32
    return %arg0, %arg1, %c0_i32 : i32, i32, i32
  }
  func.func @transform_1(%arg0: i32, %arg1: i32) -> (i32, i32, i32) {
    %c1_i32 = arith.constant 1 : i32
    %0 = arith.addi %arg1, %c1_i32 : i32
    %c1_i32_0 = arith.constant 1 : i32
    %1 = arith.muli %0, %c1_i32_0 : i32
    %c0_i32 = arith.constant 0 : i32
    %c0_i32_1 = arith.constant 0 : i32
    return %arg0, %1, %c0_i32 : i32, i32, i32
  }
  func.func @transform_2(%arg0: i32, %arg1: i32) -> (i32, i32) {
    %c0_i32 = arith.constant 0 : i32
    %c0_i32_0 = arith.constant 0 : i32
    %c0_i32_1 = arith.constant 0 : i32
    return %c0_i32, %c0_i32_0 : i32, i32
  }
  func.func @transform_3(%arg0: i32, %arg1: i32) -> (i32, i32, i32) {
    %c0_i32 = arith.constant 0 : i32
    %c0_i32_0 = arith.constant 0 : i32
    return %arg0, %arg1, %c0_i32 : i32, i32, i32
  }
}

</mosaic_0001>

<bundles_post_ra>
// kernel: stft_forward.1
= control target key start
LH: loop header
LB: loop body
LE: loop exit
PB: predicated region body
PF: predicated region fallthrough
CT: control target
= control target key end

     0   :  { %s757_s12 = smov 0   ;;  %s759_s13 = smov 0   ;;  %s1186_s0 = inlined_call_operand.vmem [shape: f32[2,16,64], index: 0, kind: input, shape index: {}, may-alias: {0,1}]   ;;  %s1187_s1 = inlined_call_operand.vmem [shape: f32[2,16,64], index: 1, kind: input, shape index: {}, may-alias: {0,1}]   ;;  %s1188_s2 = inlined_call_operand.vmem [shape: f32[256,512], index: 2, kind: input, shape index: {}]   ;;  %s1189_s3 = inlined_call_operand.vmem [shape: f32[2,8,256], index: 3, kind: output, shape index: {}]  }
   0x1   :  { %s761_s14 = smov 0  }
   0x2 LB: > { %s25_s15 = sadd.s32 1, %s730_s13  ;;  %p669_p0 = scmp.ge.s32.totalorder %s734_s14, 1  ;;  %s734_s14 = sphi %s761_s14, %s13_s14   ;;  %s730_s13 = sphi %s759_s13, %s1191_s13   ;;  %s726_s12 = sphi %s757_s12, %s1190_s12  }
   0x3   : > { %p27_p1 = scmp.ge.s32.totalorder %s25_s15, 2  ;;  %p175_p2 = scmp.lt.s32.totalorder %s734_s14, 3 }
   0x5   : > { %s1193_s15 = smov (%p27_p1, %s25_s15), 0  ;;  %p176_p3 = pnand %p669_p0, %p175_p2 }
   0x6   : > { %p215_p4 = scmp.lt.s32.totalorder (!%p176_p3), %s726_s12, 1 }
   0x7   : > { %179 = sbr.rel (%p176_p3) target bundleno = 373 (0x175), region = 32 }
   0xc   : > { %v327_v0 = vld [vmem:[%s1188_s2 + $0x1e8] sm:$0xff]  ;;  %v329_v1 = vld [vmem:[%s1188_s2 + $0x1f8] sm:$0xff]  ;;  %v326_v2 = vld [vmem:[%s1188_s2 + $0x1e0] sm:$0xff]  ;;  %s1195_s12 = smov (!%p215_p4, %s726_s12), 1  ;;  %vm243_vm0 = vcmask 523264   ;;  %vm254_vm1 = vcmask 1048064  }
   0xd   : > { %394 = vmatprep.subr.mxu0 %v327_v0  ;;  %465 = vmatprep.subr.mxu1 %v329_v1  ;;  %v328_v3 = vld [vmem:[%s1188_s2 + $0x1f0] sm:$0xff]  ;;  %v323_v4 = vld [vmem:[%s1188_s2 + $0x1c8] sm:$0xff]  ;;  %v325_v5 = vld [vmem:[%s1188_s2 + $0x1d8] sm:$0xff]  ;;  %s811_s17 = sshll.u32 %s1195_s12, 4 }
   0xe   : > { %395 = vmatpush1.msra.mxu0 %v326_v2  ;;  %466 = vmatpush1.msra.mxu1 %v328_v3  ;;  %v322_v6 = vld [vmem:[%s1188_s2 + $0x1c0] sm:$0xff]  ;;  %v324_v7 = vld [vmem:[%s1188_s2 + $0x1d0] sm:$0xff]  ;;  %v319_v8 = vld [vmem:[%s1188_s2 + $0x1a8] sm:$0xff]  ;;  %s222_s24 = scalar_lea.vmem %s1186_s0, %s811_s17  ;;  %s680_s25 = sadd.s32 8, %s811_s17 }
   0xf   : > { %396 = vmatprep.subr.mxu0 %v323_v4  ;;  %467 = vmatprep.subr.mxu1 %v325_v5  ;;  %v321_v9 = vld [vmem:[%s1188_s2 + $0x1b8] sm:$0xff]  ;;  %v318_v10 = vld [vmem:[%s1188_s2 + $0x1a0] sm:$0xff]  ;;  %v320_v11 = vld [vmem:[%s1188_s2 + $0x1b0] sm:$0xff]  ;;  %s231_s4 = scalar_lea.vmem %s1187_s1, %s680_s25  ;;  %s736_s25 = smov 64  }
  0x10   : > { %397 = vmatpush1.msra.mxu0 %v322_v6  ;;  %468 = vmatpush1.msra.mxu1 %v324_v7  ;;  %v315_v12 = vld [vmem:[%s1188_s2 + $0x188] sm:$0xff]  ;;  %v317_v13 = vld [vmem:[%s1188_s2 + $0x198] sm:$0xff]  ;;  %v314_v14 = vld [vmem:[%s1188_s2 + $0x180] sm:$0xff]  ;;  %s241_s29 = scalar_lea.vmem %s1189_s3, %s811_s17 }
  0x11   : > { %398 = vmatprep.subr.mxu0 %v319_v8  ;;  %469 = vmatprep.subr.mxu1 %v321_v9  ;;  %v316_v15 = vld [vmem:[%s1188_s2 + $0x190] sm:$0xff]  ;;  %v242_v16 = vld [vmem:[%s222_s24] sm:$0xff]  ;;  %v311_v17 = vld [vmem:[%s1188_s2 + $0x168] sm:$0xff] }
  0x12   : > { %399 = vmatpush1.msra.mxu0 %v318_v10  ;;  %470 = vmatpush1.msra.mxu1 %v320_v11  ;;  %v313_v18 = vld [vmem:[%s1188_s2 + $0x178] sm:$0xff]  ;;  %244 = vst.msk [vmem:[#allocation3] sm:$0xff] %vm243_vm0, %v242_v16  ;;  %v245_v19 = vld [vmem:[%s231_s4] sm:$0xff]  ;;  %v312_v21 = vld [vmem:[%s1188_s2 + $0x170] sm:$0xff] }
  0x13   : > { %400 = vmatprep.subr.mxu0 %v315_v12  ;;  %471 = vmatprep.subr.mxu1 %v317_v13  ;;  %v310_v20 = vld [vmem:[%s1188_s2 + $0x160] sm:$0xff]  ;;  %246 = vst.msk [vmem:[#allocation3 + $0x8] sm:$0xff] %vm243_vm0, %v245_v19  ;;  %v307_v22 = vld [vmem:[%s1188_s2 + $0x148] sm:$0xff]  ;;  %v309_v23 = vld [vmem:[%s1188_s2 + $0x158] sm:$0xff] }
  0x14   : > { %401 = vmatpush1.msra.mxu0 %v314_v14  ;;  %472 = vmatpush1.msra.mxu1 %v316_v15  ;;  %v306_v24 = vld [vmem:[%s1188_s2 + $0x140] sm:$0xff]  ;;  %v308_v25 = vld [vmem:[%s1188_s2 + $0x150] sm:$0xff]  ;;  %v303_v26 = vld [vmem:[%s1188_s2 + $0x128] sm:$0xff] }
  0x15   : > { %402 = vmatprep.subr.mxu0 %v311_v17  ;;  %473 = vmatprep.subr.mxu1 %v313_v18  ;;  %v305_v27 = vld [vmem:[%s1188_s2 + $0x138] sm:$0xff]  ;;  %v302_v28 = vld [vmem:[%s1188_s2 + $0x120] sm:$0xff]  ;;  %v304_v29 = vld [vmem:[%s1188_s2 + $0x130] sm:$0xff] }
  0x16   : > { %403 = vmatpush1.msra.mxu0 %v310_v20  ;;  %474 = vmatpush1.msra.mxu1 %v312_v21  ;;  %v299_v30 = vld [vmem:[%s1188_s2 + $0x108] sm:$0xff]  ;;  %v301_v31 = vld [vmem:[%s1188_s2 + $0x118] sm:$0xff]  ;;  %v298_v32 = vld [vmem:[%s1188_s2 + $0x100] sm:$0xff] }
  0x17   : > { %404 = vmatprep.subr.mxu0 %v307_v22  ;;  %475 = vmatprep.subr.mxu1 %v309_v23  ;;  %v300_v33 = vld [vmem:[%s1188_s2 + $0x110] sm:$0xff]  ;;  %v295_v34 = vld [vmem:[%s1188_s2 + $0xe8] sm:$0xff]  ;;  %v297_v36 = vld [vmem:[%s1188_s2 + $0xf8] sm:$0xff] }
  0x18   : > { %405 = vmatpush1.msra.mxu0 %v306_v24  ;;  %476 = vmatpush1.msra.mxu1 %v308_v25  ;;  %v294_v37 = vld [vmem:[%s1188_s2 + $0xe0] sm:$0xff]  ;;  %v296_v38 = vld [vmem:[%s1188_s2 + $0xf0] sm:$0xff]  ;;  %v291_v39 = vld [vmem:[%s1188_s2 + $0xc8] sm:$0xff] }
  0x19   : > { %406 = vmatprep.subr.mxu0 %v303_v26  ;;  %477 = vmatprep.subr.mxu1 %v305_v27  ;;  %v293_v41 = vld [vmem:[%s1188_s2 + $0xd8] sm:$0xff]  ;;  %v290_v42 = vld [vmem:[%s1188_s2 + $0xc0] sm:$0xff]  ;;  %v292_v43 = vld [vmem:[%s1188_s2 + $0xd0] sm:$0xff] }
  0x1a   : > { %407 = vmatpush1.msra.mxu0 %v302_v28  ;;  %478 = vmatpush1.msra.mxu1 %v304_v29  ;;  %v258_v35 = vld [vmem:[#allocation3 + $0x3] sm:$0xff]  ;;  %v287_v44 = vld [vmem:[%s1188_s2 + $0xa8] sm:$0xff]  ;;  %v286_v46 = vld [vmem:[%s1188_s2 + $0xa0] sm:$0xff] }
  0x1b   : > { %408 = vmatprep.subr.mxu0 %v299_v30  ;;  %479 = vmatprep.subr.mxu1 %v301_v31  ;;  %v249_v40 = vld [vmem:[#allocation3 + $0x1] sm:$0xff]  ;;  %v283_v48 = vld [vmem:[%s1188_s2 + $0x88] sm:$0xff]  ;;  %v282_v50 = vld [vmem:[%s1188_s2 + $0x80] sm:$0xff] }
  0x1c   : > { %260 = vrot.lane.b32.xlu0 %v258_v35, %s736_s25  ;;  %409 = vmatpush1.msra.mxu0 %v298_v32  ;;  %v289_v45 = vld [vmem:[%s1188_s2 + $0xb8] sm:$0xff]  ;;  %v288_v47 = vld [vmem:[%s1188_s2 + $0xb0] sm:$0xff]  ;;  %v279_v52 = vld [vmem:[%s1188_s2 + $0x68] sm:$0xff] }
  0x1d   : > { %480 = vmatpush1.msra.mxu1 %v300_v33  ;;  %410 = vmatprep.subr.mxu0 %v295_v34  ;;  %v285_v49 = vld [vmem:[%s1188_s2 + $0x98] sm:$0xff]  ;;  %v284_v51 = vld [vmem:[%s1188_s2 + $0x90] sm:$0xff]  ;;  %v278_v54 = vld [vmem:[%s1188_s2 + $0x60] sm:$0xff] }
  0x1e   : > { %481 = vmatprep.subr.mxu1 %v297_v36  ;;  %411 = vmatpush1.msra.mxu0 %v294_v37  ;;  %v281_v53 = vld [vmem:[%s1188_s2 + $0x78] sm:$0xff]  ;;  %v280_v55 = vld [vmem:[%s1188_s2 + $0x70] sm:$0xff]  ;;  %v275_v56 = vld [vmem:[%s1188_s2 + $0x48] sm:$0xff] }
  0x1f   : > { %482 = vmatpush1.msra.mxu1 %v296_v38  ;;  %412 = vmatprep.subr.mxu0 %v291_v39  ;;  %v277_v57 = vld [vmem:[%s1188_s2 + $0x58] sm:$0xff]  ;;  %v274_v58 = vld [vmem:[%s1188_s2 + $0x40] sm:$0xff]  ;;  %v276_v59 = vld [vmem:[%s1188_s2 + $0x50] sm:$0xff] }
  0x20   : > { %251 = vrot.lane.b32.xlu0 %v249_v40, %s736_s25  ;;  %483 = vmatprep.subr.mxu1 %v293_v41  ;;  %v271_v60 = vld [vmem:[%s1188_s2 + $0x28] sm:$0xff]  ;;  %v273_v61 = vld [vmem:[%s1188_s2 + $0x38] sm:$0xff]  ;;  %v270_v62 = vld [vmem:[%s1188_s2 + $0x20] sm:$0xff] }
  0x21   : > { %413 = vmatpush1.msra.mxu0 %v290_v42  ;;  %484 = vmatpush1.msra.mxu1 %v292_v43  ;;  %v272_v63 = vld [vmem:[%s1188_s2 + $0x30] sm:$0xff]  ;;  %v267_v0 = vld [vmem:[%s1188_s2 + $0x8] sm:$0xff]  ;;  %v269_v1 = vld [vmem:[%s1188_s2 + $0x18] sm:$0xff] }
  0x22   : > { %414 = vmatprep.subr.mxu0 %v287_v44  ;;  %485 = vmatprep.subr.mxu1 %v289_v45  ;;  %v266_v2 = vld [vmem:[%s1188_s2] sm:$0xff]  ;;  %v268_v3 = vld [vmem:[%s1188_s2 + $0x10] sm:$0xff]  ;;  %v391_v4 = vld [vmem:[%s1188_s2 + $0x3e8] sm:$0xff] }
  0x23   : > { %415 = vmatpush1.msra.mxu0 %v286_v46  ;;  %486 = vmatpush1.msra.mxu1 %v288_v47  ;;  %v393_v5 = vld [vmem:[%s1188_s2 + $0x3f8] sm:$0xff]  ;;  %v390_v6 = vld [vmem:[%s1188_s2 + $0x3e0] sm:$0xff]  ;;  %v392_v7 = vld [vmem:[%s1188_s2 + $0x3f0] sm:$0xff] }
  0x24   : > { %416 = vmatprep.subr.mxu0 %v283_v48  ;;  %487 = vmatprep.subr.mxu1 %v285_v49  ;;  %v387_v8 = vld [vmem:[%s1188_s2 + $0x3c8] sm:$0xff]  ;;  %v389_v9 = vld [vmem:[%s1188_s2 + $0x3d8] sm:$0xff]  ;;  %v386_v10 = vld [vmem:[%s1188_s2 + $0x3c0] sm:$0xff] }
  0x25   : > { %417 = vmatpush1.msra.mxu0 %v282_v50  ;;  %488 = vmatpush1.msra.mxu1 %v284_v51  ;;  %v388_v11 = vld [vmem:[%s1188_s2 + $0x3d0] sm:$0xff]  ;;  %v383_v12 = vld [vmem:[%s1188_s2 + $0x3a8] sm:$0xff]  ;;  %v385_v13 = vld [vmem:[%s1188_s2 + $0x3b8] sm:$0xff] }
  0x26   : > { %418 = vmatprep.subr.mxu0 %v279_v52  ;;  %489 = vmatprep.subr.mxu1 %v281_v53  ;;  %v382_v14 = vld [vmem:[%s1188_s2 + $0x3a0] sm:$0xff]  ;;  %v384_v15 = vld [vmem:[%s1188_s2 + $0x3b0] sm:$0xff]  ;;  %v379_v17 = vld [vmem:[%s1188_s2 + $0x388] sm:$0xff] }
  0x27   : > { %419 = vmatpush1.msra.mxu0 %v278_v54  ;;  %490 = vmatpush1.msra.mxu1 %v280_v55  ;;  %v256_v16 = vld [vmem:[#allocation3 + $0x2] sm:$0xff]  ;;  %v378_v19 = vld [vmem:[%s1188_s2 + $0x380] sm:$0xff]  ;;  %v375_v21 = vld [vmem:[%s1188_s2 + $0x368] sm:$0xff] }
  0x28   : > { %420 = vmatprep.subr.mxu0 %v275_v56  ;;  %491 = vmatprep.subr.mxu1 %v277_v57  ;;  %v381_v18 = vld [vmem:[%s1188_s2 + $0x398] sm:$0xff]  ;;  %257 = vst.msk [vmem:[#allocation2 + $0x8] sm:$0xff] %vm243_vm0, %v256_v16  ;;  %v380_v20 = vld [vmem:[%s1188_s2 + $0x390] sm:$0xff]  ;;  %v374_v24 = vld [vmem:[%s1188_s2 + $0x360] sm:$0xff] }
  0x29   : > { %421 = vmatpush1.msra.mxu0 %v274_v58  ;;  %492 = vmatpush1.msra.mxu1 %v276_v59  ;;  %v377_v22 = vld [vmem:[%s1188_s2 + $0x378] sm:$0xff]  ;;  %v247_v23 = vld [vmem:[#allocation3] sm:$0xff]  ;;  %v371_v26 = vld [vmem:[%s1188_s2 + $0x348] sm:$0xff] }
  0x2a   : > { %422 = vmatprep.subr.mxu0 %v271_v60  ;;  %493 = vmatprep.subr.mxu1 %v273_v61  ;;  %v376_v25 = vld [vmem:[%s1188_s2 + $0x370] sm:$0xff]  ;;  %248 = vst.msk [vmem:[#allocation2] sm:$0xff] %vm243_vm0, %v247_v23  ;;  %v373_v27 = vld [vmem:[%s1188_s2 + $0x358] sm:$0xff]  ;;  %v370_v28 = vld [vmem:[%s1188_s2 + $0x340] sm:$0xff] }
  0x2b   : > { %423 = vmatpush1.msra.mxu0 %v270_v62  ;;  %494 = vmatpush1.msra.mxu1 %v272_v63  ;;  %v372_v29 = vld [vmem:[%s1188_s2 + $0x350] sm:$0xff]  ;;  %v367_v30 = vld [vmem:[%s1188_s2 + $0x328] sm:$0xff]  ;;  %v369_v31 = vld [vmem:[%s1188_s2 + $0x338] sm:$0xff] }
  0x2c   : > { %424 = vmatprep.subr.mxu0 %v267_v0  ;;  %495 = vmatprep.subr.mxu1 %v269_v1  ;;  %v366_v32 = vld [vmem:[%s1188_s2 + $0x320] sm:$0xff]  ;;  %v368_v33 = vld [vmem:[%s1188_s2 + $0x330] sm:$0xff]  ;;  %v363_v34 = vld [vmem:[%s1188_s2 + $0x308] sm:$0xff] }
  0x2d   : > { %425 = vmatpush1.msra.mxu0 %v266_v2  ;;  %496 = vmatpush1.msra.mxu1 %v268_v3  ;;  %v365_v35 = vld [vmem:[%s1188_s2 + $0x318] sm:$0xff]  ;;  %v362_v36 = vld [vmem:[%s1188_s2 + $0x300] sm:$0xff]  ;;  %v364_v37 = vld [vmem:[%s1188_s2 + $0x310] sm:$0xff] }
  0x2e   : > { %426 = vmatprep.subr.mxu0 %v391_v4  ;;  %497 = vmatprep.subr.mxu1 %v393_v5  ;;  %v359_v38 = vld [vmem:[%s1188_s2 + $0x2e8] sm:$0xff]  ;;  %v361_v39 = vld [vmem:[%s1188_s2 + $0x2f8] sm:$0xff]  ;;  %v358_v40 = vld [vmem:[%s1188_s2 + $0x2e0] sm:$0xff] }
  0x2f   : > { %427 = vmatpush2.msra.mxu0 %v390_v6  ;;  %498 = vmatpush2.msra.mxu1 %v392_v7  ;;  %v360_v41 = vld [vmem:[%s1188_s2 + $0x2f0] sm:$0xff]  ;;  %v355_v42 = vld [vmem:[%s1188_s2 + $0x2c8] sm:$0xff]  ;;  %v357_v43 = vld [vmem:[%s1188_s2 + $0x2d8] sm:$0xff] }
  0x30   : > { %428 = vmatprep.subr.mxu0 %v387_v8  ;;  %499 = vmatprep.subr.mxu1 %v389_v9  ;;  %v354_v44 = vld [vmem:[%s1188_s2 + $0x2c0] sm:$0xff]  ;;  %v356_v45 = vld [vmem:[%s1188_s2 + $0x2d0] sm:$0xff]  ;;  %v351_v46 = vld [vmem:[%s1188_s2 + $0x2a8] sm:$0xff] }
  0x31   : > { %429 = vmatpush2.msra.mxu0 %v386_v10  ;;  %500 = vmatpush2.msra.mxu1 %v388_v11  ;;  %v353_v47 = vld [vmem:[%s1188_s2 + $0x2b8] sm:$0xff]  ;;  %v350_v48 = vld [vmem:[%s1188_s2 + $0x2a0] sm:$0xff]  ;;  %v352_v49 = vld [vmem:[%s1188_s2 + $0x2b0] sm:$0xff] }
  0x32   : > { %430 = vmatprep.subr.mxu0 %v383_v12  ;;  %501 = vmatprep.subr.mxu1 %v385_v13  ;;  %v347_v50 = vld [vmem:[%s1188_s2 + $0x288] sm:$0xff]  ;;  %v349_v51 = vld [vmem:[%s1188_s2 + $0x298] sm:$0xff]  ;;  %v346_v52 = vld [vmem:[%s1188_s2 + $0x280] sm:$0xff] }
  0x33   : > { %431 = vmatpush2.msra.mxu0 %v382_v14  ;;  %502 = vmatpush2.msra.mxu1 %v384_v15  ;;  %v348_v53 = vld [vmem:[%s1188_s2 + $0x290] sm:$0xff]  ;;  %v343_v54 = vld [vmem:[%s1188_s2 + $0x268] sm:$0xff]  ;;  %v345_v55 = vld [vmem:[%s1188_s2 + $0x278] sm:$0xff] }
  0x34   : > { %432 = vmatprep.subr.mxu0 %v379_v17  ;;  %503 = vmatprep.subr.mxu1 %v381_v18  ;;  %v342_v56 = vld [vmem:[%s1188_s2 + $0x260] sm:$0xff]  ;;  %v344_v57 = vld [vmem:[%s1188_s2 + $0x270] sm:$0xff]  ;;  %v339_v58 = vld [vmem:[%s1188_s2 + $0x248] sm:$0xff] }
  0x35   : > { %433 = vmatpush2.msra.mxu0 %v378_v19  ;;  %504 = vmatpush2.msra.mxu1 %v380_v20  ;;  %v341_v59 = vld [vmem:[%s1188_s2 + $0x258] sm:$0xff]  ;;  %v338_v60 = vld [vmem:[%s1188_s2 + $0x240] sm:$0xff]  ;;  %v340_v61 = vld [vmem:[%s1188_s2 + $0x250] sm:$0xff] }
  0x36   : > { %434 = vmatprep.subr.mxu0 %v375_v21  ;;  %505 = vmatprep.subr.mxu1 %v377_v22  ;;  %v335_v62 = vld [vmem:[%s1188_s2 + $0x228] sm:$0xff]  ;;  %v337_v63 = vld [vmem:[%s1188_s2 + $0x238] sm:$0xff]  ;;  %v334_v0 = vld [vmem:[%s1188_s2 + $0x220] sm:$0xff] }
  0x37   : > { %435 = vmatpush2.msra.mxu0 %v374_v24  ;;  %506 = vmatpush2.msra.mxu1 %v376_v25  ;;  %v336_v1 = vld [vmem:[%s1188_s2 + $0x230] sm:$0xff]  ;;  %v331_v2 = vld [vmem:[%s1188_s2 + $0x208] sm:$0xff]  ;;  %v333_v3 = vld [vmem:[%s1188_s2 + $0x218] sm:$0xff] }
  0x38   : > { %436 = vmatprep.subr.mxu0 %v371_v26  ;;  %507 = vmatprep.subr.mxu1 %v373_v27  ;;  %v330_v4 = vld [vmem:[%s1188_s2 + $0x200] sm:$0xff]  ;;  %v332_v5 = vld [vmem:[%s1188_s2 + $0x210] sm:$0xff] }
  0x39   : > { %437 = vmatpush2.msra.mxu0 %v370_v28  ;;  %508 = vmatpush2.msra.mxu1 %v372_v29 }
  0x3a   : > { %438 = vmatprep.subr.mxu0 %v367_v30  ;;  %509 = vmatprep.subr.mxu1 %v369_v31 }
  0x3b   : > { %439 = vmatpush2.msra.mxu0 %v366_v32  ;;  %510 = vmatpush2.msra.mxu1 %v368_v33 }
  0x3c   : > { %440 = vmatprep.subr.mxu0 %v363_v34  ;;  %511 = vmatprep.subr.mxu1 %v365_v35 }
  0x3d   : > { %441 = vmatpush2.msra.mxu0 %v362_v36  ;;  %512 = vmatpush2.msra.mxu1 %v364_v37 }
  0x3e   : > { %442 = vmatprep.subr.mxu0 %v359_v38  ;;  %513 = vmatprep.subr.mxu1 %v361_v39 }
  0x3f   : > { %443 = vmatpush2.msra.mxu0 %v358_v40  ;;  %514 = vmatpush2.msra.mxu1 %v360_v41 }
  0x40   : > { %444 = vmatprep.subr.mxu0 %v355_v42  ;;  %515 = vmatprep.subr.mxu1 %v357_v43 }
  0x41   : > { %445 = vmatpush2.msra.mxu0 %v354_v44  ;;  %516 = vmatpush2.msra.mxu1 %v356_v45 }
  0x42   : > { %446 = vmatprep.subr.mxu0 %v351_v46  ;;  %517 = vmatprep.subr.mxu1 %v353_v47 }
  0x43   : > { %447 = vmatpush2.msra.mxu0 %v350_v48  ;;  %518 = vmatpush2.msra.mxu1 %v352_v49 }
  0x44   : > { %448 = vmatprep.subr.mxu0 %v347_v50  ;;  %519 = vmatprep.subr.mxu1 %v349_v51 }
  0x45   : > { %449 = vmatpush2.msra.mxu0 %v346_v52  ;;  %520 = vmatpush2.msra.mxu1 %v348_v53 }
  0x46   : > { %450 = vmatprep.subr.mxu0 %v343_v54  ;;  %521 = vmatprep.subr.mxu1 %v345_v55 }
  0x47   : > { %451 = vmatpush2.msra.mxu0 %v342_v56  ;;  %522 = vmatpush2.msra.mxu1 %v344_v57 }
  0x48   : > { %452 = vmatprep.subr.mxu0 %v339_v58  ;;  %523 = vmatprep.subr.mxu1 %v341_v59 }
  0x49   : > { %453 = vmatpush2.msra.mxu0 %v338_v60  ;;  %524 = vmatpush2.msra.mxu1 %v340_v61 }
  0x4a   : > { %454 = vmatprep.subr.mxu0 %v335_v62  ;;  %525 = vmatprep.subr.mxu1 %v337_v63 }
  0x4b   : > { %455 = vmatpush2.msra.mxu0 %v334_v0  ;;  %526 = vmatpush2.msra.mxu1 %v336_v1 }
  0x4c   : > { %456 = vmatprep.subr.mxu0 %v331_v2  ;;  %527 = vmatprep.subr.mxu1 %v333_v3 }
  0x4d   : > { %457 = vmatpush2.msra.mxu0 %v330_v4  ;;  %528 = vmatpush2.msra.mxu1 %v332_v5 }
  0x8e   : > { %v261_v6 = vpop.permute.xlu0 %260 }
  0x8f   : > { %263 = vst.msk [vmem:[#allocation2 + $0x8] sm:$0xff] %vm254_vm1, %v261_v6 }
  0x92   : > { %v252_v7 = vpop.permute.xlu0 %251 }
  0x93   : > { %255 = vst.msk [vmem:[#allocation2] sm:$0xff] %vm254_vm1, %v252_v7 }
  0x96   : > { %v265_v8 = vld [vmem:[#allocation2 + $0x8] sm:$0xff] }
  0x97   : > { %458 = vmatprep.mubr.f32.mxu0 %v265_v8  ;;  %529 = vmatprep.mubr.f32.mxu1 %v265_v8 }
  0x9a   : > { %v264_v9 = vld [vmem:[#allocation2] sm:$0xff] }
  0x9b   : > { %459 = vmatmul.mubr.f32.vlgmr.msra.gmra.mxu0 %v264_v9  ;;  %530 = vmatmul.mubr.f32.vlgmr.msra.gmra.mxu1 %v264_v9 }
 0x15b   : > { %v460_v10 = vpop.f32.mrf.mxu0  ;;  %v531_v11 = vpop.f32.mrf.mxu1 }
 0x15c   : > { %v536_v12 = vmul.f32 %v460_v10, %v460_v10  ;;  %v538_v13 = vmul.f32 %v531_v11, %v531_v11 }
 0x15d   : > { %v462_v14 = vpop.f32.mrf.mxu0  ;;  %v533_v15 = vpop.f32.mrf.mxu1 }
 0x15e   : > { %v540_v16 = vadd.f32 %v538_v13, %v536_v12  ;;  %v537_v17 = vmul.f32 %v462_v14, %v462_v14  ;;  %v539_v18 = vmul.f32 %v533_v15, %v533_v15 }
 0x160   : > { %708 = vrsqrt.f32 %v540_v16  ;;  %v541_v19 = vadd.f32 %v539_v18, %v537_v17  ;;  %vm544_vm2 = vcmp.eq.f32.partialorder %v540_v16, inf  ;;  %v547_v22 = vand.u32 2147483648, %v540_v16 }
 0x161   : > { %vm546_vm3 = vcmp.eq.f32.partialorder %v540_v16, 0.0 }
 0x162   : > { %710 = vrsqrt.f32 %v541_v19  ;;  %vm551_vm4 = vcmp.eq.f32.partialorder %v541_v19, inf  ;;  %v554_v27 = vand.u32 2147483648, %v541_v19  ;;  %vm553_vm5 = vcmp.eq.f32.partialorder %v541_v19, 0.0 }
 0x16d   : > { %v709_v20 = vpop.eup %708 }
 0x16e   : > { %v543_v21 = vmul.f32 %v709_v20, %v540_v16 }
 0x16f   : > { %v711_v23 = vpop.eup %710 }
 0x170   : > { %v545_v24 = vsel %vm544_vm2, %v540_v16, %v543_v21  ;;  %v550_v26 = vmul.f32 %v711_v23, %v541_v19 }
 0x171   : > { %v548_v25 = vsel %vm546_vm3, %v547_v22, %v545_v24 }
 0x172   : > { %556 = vst [vmem:[%s241_s29] sm:$0xff] %v548_v25  ;;  %v552_v28 = vsel %vm551_vm4, %v541_v19, %v550_v26 }
 0x173   : > { %v555_v29 = vsel %vm553_vm5, %v554_v27, %v552_v28 }
 0x174   : > { %557 = vst [vmem:[%s241_s29 + $0x8] sm:$0xff] %v555_v29 }
 0x175 PF: > { %s13_s14 = sadd.s32 1, %s734_s14   ;;  %s1190_s12 = smov %s730_s13 }
 0x176   : > { %p10_p5 = scmp.ge.s32.totalorder %s13_s14, 4   ;;  %s1191_s13 = smov %s1193_s15 }
 0x178   :  { %12 = sbr.rel (!%p10_p5) target bundleno = 2 (0x2), region = 65 }

</bundles_post_ra>
